<compile_context>
chip_gen: v7x
topology: tpu7x:2x2x1
jax: 0.10.0
libtpu: 0.0.40
codegen_flags: <defaults>
</compile_context>

<pallas_src>
import functools

import jax
import jax.numpy as jnp
from jax.experimental import pallas as pl
from jax.experimental.pallas import tpu as pltpu

COEF = 0.97  # deterministic "parameter" from __init__ (flipped_filter = [-coef, 1.0])


def _round_up(n, m):
    return ((n + m - 1) // m) * m


def _preemphasis_kernel(x_ref, o_ref, carry_ref, *, coef):
    t = pl.program_id(1)

    @pl.when(t == 0)
    def _():
        # Reflect padding: the sample preceding x[:, 0] is x[:, 1].
        carry_ref[...] = x_ref[:, 1:2]

    x = x_ref[...]  # (TB, TT) block in VMEM
    # prev[:, l] = x[:, l-1] within the tile; lane 0 takes the carried sample
    # (previous tile's last sample, or x[:, 1] on the first tile).
    prev = jnp.concatenate([carry_ref[...], x[:, :-1]], axis=1)
    o_ref[...] = x - jnp.asarray(coef, dtype=x.dtype) * prev
    # Carry the last sample of this tile for the next T tile.
    carry_ref[...] = x[:, -1:]


def pre_emphasis(x, coef=COEF, tb=256, tt=2048):
    """PreEmphasis forward: (B, T) -> (B, T)."""
    B, T = x.shape
    if T < 2:
        raise ValueError("PreEmphasis requires T >= 2 (reflect padding by 1).")

    # Tile sizes: TB multiple of 8 (sublanes), TT multiple of 128 (lanes),
    # clamped to the (rounded-up) array extents.
    TB = min(_round_up(tb, 8), _round_up(B, 8))
    TT = min(_round_up(tt, 128), _round_up(T, 128))

    Bp = _round_up(B, TB)
    Tp = _round_up(T, TT)
    xp = x if (Bp == B and Tp == T) else jnp.pad(x, ((0, Bp - B), (0, Tp - T)))

    grid = (Bp // TB, Tp // TT)
    kernel = functools.partial(_preemphasis_kernel, coef=coef)

    out = pl.pallas_call(
        kernel,
        out_shape=jax.ShapeDtypeStruct((Bp, Tp), x.dtype),
        grid_spec=pltpu.PrefetchScalarGridSpec(
            num_scalar_prefetch=0,
            grid=grid,
            in_specs=[pl.BlockSpec((TB, TT), lambda b, t: (b, t))],
            out_specs=pl.BlockSpec((TB, TT), lambda b, t: (b, t)),
            scratch_shapes=[pltpu.VMEM((TB, 1), x.dtype)],
        ),
        compiler_params=pltpu.CompilerParams(
            dimension_semantics=("parallel", "arbitrary"),
        ),
        cost_estimate=pl.CostEstimate(
            flops=2 * Bp * Tp,
            transcendentals=0,
            bytes_accessed=2 * Bp * Tp * x.dtype.itemsize,
        ),
    )(xp)

    if Bp != B or Tp != T:
        out = out[:B, :T]
    return out


def pre_emphasis_ref(x, coef=COEF):
    # Pure-JAX reference (matches PyTorch reflect-pad + conv1d([-coef, 1.0])).
    prev = jnp.concatenate([x[:, 1:2], x[:, :-1]], axis=1)
    return x - coef * prev


if __name__ == "__main__":
    key = jax.random.PRNGKey(0)

    # Case 1: multi-tile along T (exercises the cross-tile carry): grid (1, 4).
    B1, T1 = 8, 1024
    x1 = jax.random.normal(key, (B1, T1), dtype=jnp.float32)
    out1 = jax.block_until_ready(pre_emphasis(x1, tb=8, tt=256))
    ref1 = pre_emphasis_ref(x1)
    assert out1.shape == (B1, T1)
    assert jnp.allclose(out1, ref1, atol=1e-6, rtol=1e-6)

    # Case 2: non-multiple shape (exercises the padding path), default tiles.
    B2, T2 = 3, 200
    x2 = jax.random.normal(jax.random.PRNGKey(1), (B2, T2), dtype=jnp.float32)
    out2 = jax.block_until_ready(pre_emphasis(x2))
    ref2 = pre_emphasis_ref(x2)
    assert out2.shape == (B2, T2)
    assert jnp.allclose(out2, ref2, atol=1e-6, rtol=1e-6)

    print("KERNEL_OK")
</pallas_src>

<mosaic_0001>
module attributes {stable_mosaic.version = 11 : i64} {
  func.func @_preemphasis_kernel(%arg0: i32, %arg1: i32, %arg2: memref<8x256xf32, #tpu.memory_space<vmem>>, %arg3: memref<8x256xf32, #tpu.memory_space<vmem>>, %arg4: memref<8x1xf32, #tpu.memory_space<vmem>>) attributes {dimension_semantics = [#tpu.dimension_semantics<parallel>, #tpu.dimension_semantics<arbitrary>], iteration_bounds = array<i64: 1, 4>, scalar_prefetch = 0 : i64, scratch_operands = 1 : i64, tpu.core_type = #tpu.core_type<tc>, window_params = [{transform_indices = @transform_0, window_bounds = array<i64: 8, 256>}, {transform_indices = @transform_1, window_bounds = array<i64: 8, 256>}]} {
    %c0_i32 = arith.constant 0 : i32
    %0 = arith.cmpi eq, %arg1, %c0_i32 : i32
    %1 = arith.extui %0 : i1 to i32
    %c0_i32_0 = arith.constant 0 : i32
    %2 = arith.cmpi ne, %1, %c0_i32_0 : i32
    scf.if %2 {
      %c0_8 = arith.constant 0 : index
      %c1 = arith.constant 1 : index
      %13 = vector.load %arg2[%c0_8, %c1] : memref<8x256xf32, #tpu.memory_space<vmem>>, vector<8x1xf32>
      %c0_9 = arith.constant 0 : index
      %c0_10 = arith.constant 0 : index
      %14 = vector.load %arg4[%c0_9, %c0_10] : memref<8x1xf32, #tpu.memory_space<vmem>>, vector<8x1xf32>
      tpu.vector_store %arg4[%c0_9, %c0_10], %13 {strides = array<i32>} : memref<8x1xf32, #tpu.memory_space<vmem>>, vector<8x1xf32>,
    } else {
    }
    %c0 = arith.constant 0 : index
    %c0_1 = arith.constant 0 : index
    %3 = vector.load %arg2[%c0, %c0_1] : memref<8x256xf32, #tpu.memory_space<vmem>>, vector<8x256xf32>
    %c0_2 = arith.constant 0 : index
    %c0_3 = arith.constant 0 : index
    %4 = vector.load %arg4[%c0_2, %c0_3] : memref<8x1xf32, #tpu.memory_space<vmem>>, vector<8x1xf32>
    %5 = vector.extract_strided_slice %3 {offsets = [0, 0], sizes = [8, 255], strides = [1, 1]} : vector<8x256xf32> to vector<8x255xf32>
    %6 = tpu.concatenate %4, %5 in 1 : vector<8x1xf32>, vector<8x255xf32> -> vector<8x256xf32>
    %cst = arith.constant 9.700000e-01 : f32
    %7 = vector.broadcast %cst : f32 to vector<8x256xf32>
    %8 = arith.mulf %7, %6 : vector<8x256xf32>
    %9 = arith.subf %3, %8 : vector<8x256xf32>
    %c0_4 = arith.constant 0 : index
    %c0_5 = arith.constant 0 : index
    %10 = vector.load %arg3[%c0_4, %c0_5] : memref<8x256xf32, #tpu.memory_space<vmem>>, vector<8x256xf32>
    tpu.vector_store %arg3[%c0_4, %c0_5], %9 {strides = array<i32>} : memref<8x256xf32, #tpu.memory_space<vmem>>, vector<8x256xf32>,
    %11 = vector.extract_strided_slice %3 {offsets = [0, 255], sizes = [8, 1], strides = [1, 1]} : vector<8x256xf32> to vector<8x1xf32>
    %c0_6 = arith.constant 0 : index
    %c0_7 = arith.constant 0 : index
    %12 = vector.load %arg4[%c0_6, %c0_7] : memref<8x1xf32, #tpu.memory_space<vmem>>, vector<8x1xf32>
    tpu.vector_store %arg4[%c0_6, %c0_7], %11 {strides = array<i32>} : memref<8x1xf32, #tpu.memory_space<vmem>>, vector<8x1xf32>,
    return
  }
  func.func @transform_0(%arg0: i32, %arg1: i32) -> (i32, i32) {
    %c0_i32 = arith.constant 0 : i32
    return %arg0, %arg1 : i32, i32
  }
  func.func @transform_1(%arg0: i32, %arg1: i32) -> (i32, i32) {
    %c0_i32 = arith.constant 0 : i32
    return %arg0, %arg1 : i32, i32
  }
}

</mosaic_0001>

<bundles_post_ra>
// kernel: tpu_custom_call.1
= control target key start
LH: loop header
LB: loop body
LE: loop exit
PB: predicated region body
PF: predicated region fallthrough
CT: control target
= control target key end

     0   :  { %6 = vsyncpa [#allocation4], 0  ;;  %s673_s0 = inlined_call_operand.hbm [shape: f32[8,1024], index: 0, kind: input, shape index: {}]   ;;  %s674_s1 = inlined_call_operand.hbm [shape: f32[8,1024], index: 1, kind: output, shape index: {}]  }
   0x1   :  { %8 = vsyncpa [#allocation4 + $0x1], 0 }
   0x2   :  { %9 = vsyncpa [#allocation5], 0 }
   0x3   :  { %11 = vsyncpa [#allocation5 + $0x1], 0  ;;  %s497_s6 = smov 0   ;;  %s499_s7 = smov 0  }
   0x4   :  { %s501_s8 = smov 0   ;;  %s503_s9 = smov 0  }
   0x5   :  { %s505_s10 = smov 0   ;;  %s507_s11 = smov 0  }
   0x6 LB: > { %s287_s12 = sadd.s32 4294967295, %s481_s11   ;;  %s288_s13 = sadd.s32 4294967294, %s481_s11   ;;  %s481_s11 = sphi %s507_s11, %s17_s11   ;;  %s477_s10 = sphi %s505_s10, %s689_s10   ;;  %s473_s9 = sphi %s503_s9, %s688_s9   ;;  %s469_s8 = sphi %s501_s8, %s687_s8   ;;  %s465_s7 = sphi %s499_s7, %s686_s7   ;;  %s461_s6 = sphi %s497_s6, %s685_s6  }
   0x7   : > { %s26_s14 = sadd.s32 1, %s477_s10  ;;  %s38_s15 = sadd.s32 1, %s469_s8 }
   0x8   : > { %p27_p0 = scmp.ge.s32.totalorder %s26_s14, 4  ;;  %p45_p1 = scmp.ne.s32.totalorder %s469_s8, %s465_s7 }
   0x9   : > { %p46_p2 = scmp.eq.s32.totalorder %s481_s11, 0  ;;  %p51_p3 = scmp.ne.s32.totalorder %s465_s7, %s461_s6 }
   0xa   : > { %s691_s14 = smov (%p27_p0, %s26_s14), 0  ;;  %p52_p5 = scmp.eq.s32.totalorder %s287_s12, 0 }
   0xb   : > { %p538_p4 = por %p46_p2, %p45_p1  ;;  %s34_s17 = ssub.s32 %s477_s10, %s691_s14 }
   0xc   : > { %p77_p6 = scmp.eq.s32.totalorder %s287_s12, 3  ;;  %p36_p7 = scmp.eq.s32.totalorder %s34_s17, 0 }
   0xd   : > { %p544_p8 = por %p52_p5, %p51_p3  ;;  %p83_p10 = scmp.eq.s32.totalorder %s288_s13, 3 }
   0xe   : > { %p548_p9 = por %p77_p6, %p45_p1  ;;  %p317_p12 = scmp.lt.s32.totalorder %s481_s11, 4 }
   0xf   : > { %s553_s20 = scalar_select %p36_p7, %s469_s8, %s38_s15  }
  0x10   : > { %s678_s19 = scalar_select %p548_p9, 1, 0 }
  0x11   : > { %p555_p11 = por %p83_p10, %p51_p3  ;;  %s103_s22 = sand.u32 1, %s469_s8  }
  0x12   : > { %s291_s23 = sshll.u32 %s103_s22, 4  ;;  %s303_s24 = sshll.u32 %s477_s10, 8 }
  0x13   : > { %s679_s21 = scalar_select %p555_p11, 1, 0 }
  0x14   : > { %s565_s27 = scalar_lea.hbm %s673_s0, %s303_s24  ;;  %s107_s28 = scalar_lea.vmem [#allocation3], %s291_s23 }
  0x15   : > { %s117_s29 = sshll.u32 %s107_s28, 4  ;;  %p571_p13 = pnand %p317_p12, %p538_p4  ;;  %s567_s29 = int_to_ptr.vmem [resolvable:$true] %s117_s29 }
  0x16   : > { %s104_s2 = scalar_lea.sflag [#allocation4], %s103_s22  ;;  %s369_s3 = scalar_lea.hbm %s565_s27, 256 }
  0x17   : > { %p370_p2 = scmp.ne.s32.totalorder %s565_s27, %s369_s3  ;;  %p371_p3 = pneg %p571_p13 }
  0x18   : > { %s374_s12 = scalar_lea.hbm %s673_s0, 1024  ;;  %p375_p4 = scmp.lt.u32.totalorder %s565_s27, %s673_s0 }
  0x19   : > { %p372_p5 = pnand %p371_p3, %p370_p2  ;;  %p376_p7 = scmp.lt.u32.totalorder %s374_s12, %s369_s3 }
  0x1a   : > { %p378_p12 = scmp.lt.u32.totalorder %s369_s3, %s565_s27 }
  0x1b   : > { %p373_p6 = pneg %p372_p5  ;;  %p377_p10 = por %p376_p7, %p375_p4 }
  0x1d   : > { %p379_p0 = por %p378_p12, %p377_p10 }
  0x1f   : > { %p380_p1 = pnand %p379_p0, %p373_p6 }
  0x21   : > { %383 = shalt.err (!%p380_p1)
}
  0x22   : > { %s384_s16 = scalar_lea.vmem %s567_s29, 256  ;;  %s483_s17 = smov [#allocation3]  }
  0x23   : > { %p385_p2 = scmp.ne.s32.totalorder %s567_s29, %s384_s16  ;;  %s389_s22 = sshll.u32 %s483_s17, 4  ;;  %s390_s22 = int_to_ptr.vmem [resolvable:$false] %s389_s22 }
  0x24   : > { %s391_s23 = scalar_lea.vmem %s390_s22, 512  ;;  %p392_p9 = scmp.lt.s32.totalorder %s567_s29, %s390_s22 }
  0x25   : > { %p387_p5 = pnand %p385_p2, %p371_p3  ;;  %p393_p4 = scmp.lt.s32.totalorder %s391_s23, %s384_s16 }
  0x27   : > { %p388_p11 = pneg %p387_p5  ;;  %p394_p7 = por %p393_p4, %p392_p9 }
  0x29   : > { %p395_p10 = pnand %p394_p7, %p388_p11 }
  0x2b   : > { %398 = shalt.err (!%p395_p10)
}
  0x2c   : > { %312 = dma.hbm_to_vmem [thread:$0]  (!%p571_p13), %s565_s27, 256, %s567_s29, %s104_s2  }
  0x2d   : > { %p681_p0 = scmp.lt.s32.totalorder %s481_s11, 5  ;;  %p682_p1 = scmp.ge.s32.totalorder %s481_s11, 1 }
  0x2f   : > { %p123_p3 = pnand %p682_p1, %p681_p0 }
  0x30   : > { %s607_s24 = sand.u32 (!%p123_p3), 1, %s465_s7  }
  0x31   : > { %126 = sbr.rel (%p123_p3) target bundleno = 314 (0x13a), region = 24  ;;  %s295_s25 = sshll.u32 (!%p123_p3), %s607_s24, 4 }
  0x32   : > { %s129_s26 = scalar_lea.sflag (!%p123_p3), [#allocation4], %s607_s24  ;;  %s132_s28 = scalar_lea.vmem (!%p123_p3), [#allocation3], %s295_s25 }
  0x38   : > { %452 = dma.done.wait (%p544_p8), %s129_s26, 256  }
  0x39   : > { %454 = vsyncadd (%p544_p8), %s129_s26, 4294967040  ;;  %s615_s30 = scalar_lea.vmem [#allocation6], %s295_s25  ;;  %p297_p9 = scmp.ne.s32.totalorder %s473_s9, 0 }
  0x3a   : > { %v157_v0 = vld [vmem:[%s132_s28] sm:$0xff] (!%p297_p9)  ;;  %s484_s27 = smov (!%p297_p9), 127   ;;  %vm162_vm0 = vcmask (!%p297_p9), 7168  }
  0x3b   : > { %156 = sbr.rel (%p297_p9) target bundleno = 175 (0xaf), region = 32  ;;  %159 = vrot.lane.b32.xlu0 (!%p297_p9), %v157_v0, %s484_s27 }
  0xad   : > { %v160_v1 = vpop.permute.xlu0 %159 }
  0xae   : > { %163 = vst.msk [vmem:[#allocation2] sm:$0xff] %vm162_vm0, %v160_v1 }
  0xaf PF: > { %v164_v2 = vld [vmem:[%s132_s28] sm:$0xff]  ;;  %s485_s29 = smov 1   ;;  %v165_v3 = vld [vmem:[%s132_s28 + $0x8] sm:$0xff]  ;;  %vm173_vm1 = vcmask 7168   ;;  %s304_s18 = sshll.u32 %s473_s9, 8 }
  0xb0   : > { %169 = vrot.lane.b32.xlu0 %v164_v2, %s485_s29  ;;  %s203_s2 = sshll.u32 %s615_s30, 4  ;;  %s624_s5 = scalar_lea.hbm %s674_s1, %s304_s18  ;;  %s626_s2 = int_to_ptr.vmem [resolvable:$true] %s203_s2 }
  0xb1   : > { %s187_s12 = scalar_lea.sflag [#allocation5], %s607_s24  ;;  %s399_s13 = scalar_lea.vmem %s626_s2, 256 }
  0xb2   : > { %p400_p8 = scmp.ne.s32.totalorder %s626_s2, %s399_s13  ;;  %p683_p11 = scmp.ne.s32.totalorder %s678_s19, 0 }
  0xb3   : > { %s486_s9 = smov [#allocation6]  }
  0xb4   : > { %171 = vrot.lane.b32.xlu0 %v165_v3, %s485_s29  ;;  %p401_p13 = pnand %p400_p8, %p683_p11  ;;  %s403_s15 = sshll.u32 %s486_s9, 4  ;;  %s404_s15 = int_to_ptr.vmem [resolvable:$false] %s403_s15 }
  0xb5   : > { %v166_v4 = vld [vmem:[#allocation2] sm:$0xff]  ;;  %s405_s16 = scalar_lea.vmem %s404_s15, 512  ;;  %p406_p12 = scmp.lt.s32.totalorder %s626_s2, %s404_s15 }
  0xb6   : > { %p402_p6 = pneg %p401_p13  ;;  %p407_p2 = scmp.lt.s32.totalorder %s405_s16, %s399_s13 }
  0xb8   : > { %p408_p5 = por %p407_p2, %p406_p12 }
  0xba   : > { %p409_p4 = pnand %p408_p5, %p402_p6 }
 0x122   : > { %v170_v5 = vpop.permute.xlu0 %169 }
 0x123   : > { %v177_v6 = vsel %vm173_vm1, %v166_v4, %v170_v5 }
 0x124   : > { %v178_v7 = vmul.f32 0.97, %v177_v6 }
 0x126   : > { %v180_v8 = vsub.f32 %v164_v2, %v178_v7  ;;  %v172_v9 = vpop.permute.xlu0 %171 }
 0x127   : > { %v174_v10 = vsel %vm173_vm1, %v170_v5, %v172_v9  ;;  %185 = vst.msk [vmem:[#allocation2] sm:$0xff] %vm173_vm1, %v172_v9 }
 0x128   : > { %182 = vst [vmem:[%s615_s30] sm:$0xff] %v180_v8  ;;  %v179_v11 = vmul.f32 0.97, %v174_v10 }
 0x12a   : > { %v181_v12 = vsub.f32 %v165_v3, %v179_v11 }
 0x12c   : > { %183 = vst [vmem:[%s615_s30 + $0x8] sm:$0xff] %v181_v12 }
 0x12d   : > { %412 = shalt.err (!%p409_p4)
}
 0x12e   : > { %s413_s17 = scalar_lea.hbm %s624_s5, 256  ;;  %s417_s24 = scalar_lea.hbm %s674_s1, 1024 }
 0x12f   : > { %p414_p7 = scmp.ne.s32.totalorder %s624_s5, %s413_s17  ;;  %p418_p1 = scmp.lt.u32.totalorder %s624_s5, %s674_s1 }
 0x130   : > { %p419_p3 = scmp.lt.u32.totalorder %s417_s24, %s413_s17  ;;  %p421_p8 = scmp.lt.u32.totalorder %s413_s17, %s624_s5 }
 0x131   : > { %p415_p10 = pnand %p414_p7, %p683_p11 }
 0x132   : > { %p420_p9 = por %p419_p3, %p418_p1 }
 0x133   : > { %p416_p0 = pneg %p415_p10 }
 0x134   : > { %p422_p13 = por %p421_p8, %p420_p9 }
 0x136   : > { %p423_p6 = pnand %p422_p13, %p416_p0 }
 0x138   : > { %426 = shalt.err (!%p423_p6)
}
 0x139   : > { %307 = dma.vmem_to_hbm [thread:$0]  (%p683_p11), %s626_s2, 256, %s624_s5, %s187_s12  }
 0x13a PF: > { %p318_p12 = scmp.ge.s32.totalorder %s481_s11, 2  ;;  %s215_s28 = sand.u32 1, %s461_s6  }
 0x13b   : > { %p684_p2 = scmp.ne.s32.totalorder %s679_s21, 0  ;;  %s216_s30 = scalar_lea.sflag [#allocation5], %s215_s28 }
 0x13d   : > { %p314_p5 = pnand %p318_p12, %p684_p2 }
 0x13f   : > { %456 = dma.done.wait (!%p314_p5), %s216_s30, 256  }
 0x140   : > { %458 = vsyncadd (!%p314_p5), %s216_s30, 4294967040  ;;  %s17_s11 = sadd.s32 1, %s481_s11   ;;  %s685_s6 = smov %s465_s7 }
 0x141   : > { %p14_p4 = scmp.ge.s32.totalorder %s17_s11, 6   ;;  %s686_s7 = smov %s469_s8 }
 0x142   : > { %s687_s8 = smov %s553_s20  ;;  %s688_s9 = smov %s477_s10 }
 0x143   : > { %s689_s10 = smov %s691_s14  ;;  %16 = sbr.rel (!%p14_p4) target bundleno = 6 (0x6), region = 73 }
 0x14a   :  { %221 = vsyncpa [#allocation4], 1 }
 0x14b   :  { %223 = vsyncpa [#allocation4 + $0x1], 1 }
 0x14c   :  { %224 = vsyncpa [#allocation5], 1 }
 0x14d   :  { %226 = vsyncpa [#allocation5 + $0x1], 1 }

</bundles_post_ra>
